<compile_context>
chip_gen: v7x
topology: tpu7x:2x2x1
jax: 0.10.0
libtpu: 0.0.40
codegen_flags: <defaults>
</compile_context>

<pallas_src>
import functools

import jax
import jax.numpy as jnp
from jax.experimental import pallas as pl
from jax.experimental.pallas import tpu as pltpu


def _propagator_kernel(a_ref, sin_ref, sout_ref, scur_ref,
                       win_ref, wout_ref, wcur_ref, wct_ref, bias_ref,
                       out_ref):
    """One grid step == `bblk` batch elements. Everything fits in VMEM."""
    bblk, N, K = a_ref.shape
    D = scur_ref.shape[-1]
    rows = bblk * N
    wdt = win_ref.dtype

    A = a_ref[...]                                             # (bblk, N, K)

    # Propagation matmuls: a_in = A @ state_in, a_out = A @ state_out (f32 acc).
    a_in = jnp.einsum("bnk,bkd->bnd", A, sin_ref[...],
                      preferred_element_type=jnp.float32).reshape(rows, D)
    a_out = jnp.einsum("bnk,bkd->bnd", A, sout_ref[...],
                       preferred_element_type=jnp.float32).reshape(rows, D)

    # Leading-dim merge only (last dim preserved) -> cheap, always supported.
    s_cur = scur_ref[...].reshape(rows, D)                     # native dtype
    s_cur_f = s_cur.astype(jnp.float32)

    # Fused pre-activation, columns = [r-part | z-part | t-prelude].
    # (w_cur's t-columns are zero: the transform uses r*state_cur below.)
    g = (jnp.dot(a_in.astype(wdt), win_ref[...],
                 preferred_element_type=jnp.float32)
         + jnp.dot(a_out.astype(wdt), wout_ref[...],
                   preferred_element_type=jnp.float32)
         + jnp.dot(s_cur, wcur_ref[...],
                   preferred_element_type=jnp.float32)
         + bias_ref[...].astype(jnp.float32))                  # (rows, 3D)

    r = jax.nn.sigmoid(g[:, :D])
    z = jax.nn.sigmoid(g[:, D:2 * D])

    rs = (r * s_cur_f).astype(wct_ref.dtype)
    h_hat = jnp.tanh(g[:, 2 * D:] +
                     jnp.dot(rs, wct_ref[...],
                             preferred_element_type=jnp.float32))

    out = (1.0 - z) * s_cur_f + z * h_hat                      # (rows, D)
    # Leading-dim split only (last dim preserved) -> safe reshape before store.
    out_ref[...] = out.reshape(bblk, N, D).astype(out_ref.dtype)


@functools.partial(jax.jit, static_argnames=("bblk",))
def propagator_forward(state_in, state_out, state_cur, A, params, bblk=None):
    """params: dict with w_in (D,3D), w_out (D,3D), w_cur (D,3D), w_cur_t (D,D),
    bias (1,3D). Use pack_params() to build it from PyTorch-style weights."""
    B, N, D = state_cur.shape
    K = A.shape[2]

    if bblk is None:
        if B <= 4:
            bblk = B        # single grid step: per-step overhead dominates here
        else:
            # Largest divisor of B leaving >= 2 parallel steps (keeps both v7x
            # TensorCores busy via dimension_semantics=("parallel",)).
            bblk = max(d for d in range(1, B // 2 + 1) if B % d == 0)
    if B % bblk != 0:
        raise ValueError(f"batch {B} not divisible by bblk {bblk}")
    grid_b = B // bblk

    batch3 = lambda shp: pl.BlockSpec(shp, lambda b: (b, 0, 0))
    full2 = lambda shp: pl.BlockSpec(shp, lambda b: (0, 0))

    return pl.pallas_call(
        _propagator_kernel,
        out_shape=jax.ShapeDtypeStruct((B, N, D), state_cur.dtype),
        grid_spec=pltpu.PrefetchScalarGridSpec(
            num_scalar_prefetch=0,
            grid=(grid_b,),
            in_specs=[
                batch3((bblk, N, K)),      # A
                batch3((bblk, K, D)),      # state_in
                batch3((bblk, K, D)),      # state_out
                batch3((bblk, N, D)),      # state_cur
                full2((D, 3 * D)),         # w_in
                full2((D, 3 * D)),         # w_out
                full2((D, 3 * D)),         # w_cur (t-columns zero)
                full2((D, D)),             # w_cur_t
                full2((1, 3 * D)),         # bias [br | bz | bt]
            ],
            out_specs=batch3((bblk, N, D)),
        ),
        compiler_params=pltpu.CompilerParams(
            dimension_semantics=("parallel",)),
    )(A, state_in, state_out, state_cur,
      params["w_in"], params["w_out"], params["w_cur"], params["w_cur_t"],
      params["bias"])


def pack_params(raw, state_dim):
    """Re-stack PyTorch-style (pre-transposed) gate weights once, outside the kernel."""
    D = state_dim
    wr, wz, wt = raw["wr"], raw["wz"], raw["wt"]
    zeros = jnp.zeros((D, D), wr.dtype)
    return dict(
        w_in=jnp.concatenate([wr[:D], wz[:D], wt[:D]], axis=1),              # (D, 3D)
        w_out=jnp.concatenate([wr[D:2 * D], wz[D:2 * D], wt[D:2 * D]], axis=1),  # (D, 3D)
        w_cur=jnp.concatenate([wr[2 * D:], wz[2 * D:], zeros], axis=1),      # (D, 3D)
        w_cur_t=wt[2 * D:],                                                  # (D, D)
        bias=jnp.concatenate([raw["br"], raw["bz"], raw["bt"]], axis=1),     # (1, 3D)
    )


def reference_forward(state_in, state_out, state_cur, A, raw):
    """Pure-JAX reference mirroring the PyTorch forward exactly (unpacked weights)."""
    a_in = jnp.einsum("bnk,bkd->bnd", A, state_in)
    a_out = jnp.einsum("bnk,bkd->bnd", A, state_out)
    a = jnp.concatenate([a_in, a_out, state_cur], axis=2)
    r = jax.nn.sigmoid(a @ raw["wr"] + raw["br"][0])
    z = jax.nn.sigmoid(a @ raw["wz"] + raw["bz"][0])
    joined = jnp.concatenate([a_in, a_out, r * state_cur], axis=2)
    h_hat = jnp.tanh(joined @ raw["wt"] + raw["bt"][0])
    return (1.0 - z) * state_cur + z * h_hat


def init_params(key, state_dim):
    """PyTorch-style Linear(3D -> D) init, uniform(-1/sqrt(fan_in), 1/sqrt(fan_in)),
    stored pre-transposed as (3D, D)."""
    fan_in = state_dim * 3
    bound = 1.0 / jnp.sqrt(jnp.float32(fan_in))
    keys = jax.random.split(key, 6)

    def lin(kw, kb):
        w = jax.random.uniform(kw, (fan_in, state_dim), jnp.float32, -bound, bound)
        b = jax.random.uniform(kb, (1, state_dim), jnp.float32, -bound, bound)
        return w, b

    wr, br = lin(keys[0], keys[1])
    wz, bz = lin(keys[2], keys[3])
    wt, bt = lin(keys[4], keys[5])
    return dict(wr=wr, br=br, wz=wz, bz=bz, wt=wt, bt=bt)


if __name__ == "__main__":
    B = 2
    state_dim = 32
    n_nodes = 8
    n_edge_types = 2
    K = n_nodes * n_edge_types

    key = jax.random.PRNGKey(0)
    k_a, k_si, k_so, k_sc, k_p = jax.random.split(key, 5)

    A = jax.random.normal(k_a, (B, n_nodes, K), jnp.float32)
    state_in = jax.random.normal(k_si, (B, K, state_dim), jnp.float32)
    state_out = jax.random.normal(k_so, (B, K, state_dim), jnp.float32)
    state_cur = jax.random.normal(k_sc, (B, n_nodes, state_dim), jnp.float32)

    raw_params = init_params(k_p, state_dim)
    packed_params = pack_params(raw_params, state_dim)

    out = propagator_forward(state_in, state_out, state_cur, A, packed_params)
    out = jax.block_until_ready(out)

    ref = reference_forward(state_in, state_out, state_cur, A, raw_params)
    assert out.shape == (B, n_nodes, state_dim)
    # The weight-split decomposition changes fp summation order slightly; still
    # well within f32 tolerance for this gated (bounded) output.
    assert jnp.allclose(out, ref, atol=1e-4, rtol=1e-4), "mismatch vs reference"

    print("KERNEL_OK")
</pallas_src>

<mosaic_0001>
module attributes {stable_mosaic.version = 11 : i64} {
  func.func @_propagator_kernel(%arg0: i32, %arg1: memref<2x8x16xf32, #tpu.memory_space<vmem>>, %arg2: memref<2x16x32xf32, #tpu.memory_space<vmem>>, %arg3: memref<2x16x32xf32, #tpu.memory_space<vmem>>, %arg4: memref<2x8x32xf32, #tpu.memory_space<vmem>>, %arg5: memref<32x96xf32, #tpu.memory_space<vmem>>, %arg6: memref<32x96xf32, #tpu.memory_space<vmem>>, %arg7: memref<32x96xf32, #tpu.memory_space<vmem>>, %arg8: memref<32x32xf32, #tpu.memory_space<vmem>>, %arg9: memref<1x96xf32, #tpu.memory_space<vmem>>, %arg10: memref<2x8x32xf32, #tpu.memory_space<vmem>>) attributes {dimension_semantics = [#tpu.dimension_semantics<parallel>], iteration_bounds = array<i64: 1>, scalar_prefetch = 0 : i64, scratch_operands = 0 : i64, tpu.core_type = #tpu.core_type<tc>, window_params = [{transform_indices = @transform_0, window_bounds = array<i64: 2, 8, 16>}, {transform_indices = @transform_1, window_bounds = array<i64: 2, 16, 32>}, {transform_indices = @transform_2, window_bounds = array<i64: 2, 16, 32>}, {transform_indices = @transform_3, window_bounds = array<i64: 2, 8, 32>}, {pipeline_mode = #tpu.pipeline_mode<synchronous>, transform_indices = @transform_4, window_bounds = array<i64: 32, 96>}, {pipeline_mode = #tpu.pipeline_mode<synchronous>, transform_indices = @transform_5, window_bounds = array<i64: 32, 96>}, {pipeline_mode = #tpu.pipeline_mode<synchronous>, transform_indices = @transform_6, window_bounds = array<i64: 32, 96>}, {pipeline_mode = #tpu.pipeline_mode<synchronous>, transform_indices = @transform_7, window_bounds = array<i64: 32, 32>}, {pipeline_mode = #tpu.pipeline_mode<synchronous>, transform_indices = @transform_8, window_bounds = array<i64: 1, 96>}, {transform_indices = @transform_9, window_bounds = array<i64: 2, 8, 32>}]} {
    %c0 = arith.constant 0 : index
    %c0_0 = arith.constant 0 : index
    %c0_1 = arith.constant 0 : index
    %0 = vector.load %arg1[%c0, %c0_0, %c0_1] : memref<2x8x16xf32, #tpu.memory_space<vmem>>, vector<2x8x16xf32>
    %c0_2 = arith.constant 0 : index
    %c0_3 = arith.constant 0 : index
    %c0_4 = arith.constant 0 : index
    %1 = vector.load %arg2[%c0_2, %c0_3, %c0_4] : memref<2x16x32xf32, #tpu.memory_space<vmem>>, vector<2x16x32xf32>
    "tpu.trace_start"() <{level = 10 : i32, message = "bnk,bkd->bnd"}> : () -> ()
    %cst = arith.constant dense<0.000000e+00> : vector<2x8x32xf32>
    %2 = tpu.matmul %0, %1, %cst {dimension_numbers = #tpu.dot_dimension_numbers<[2], [1], [1], [2], [0, 0, 0, 1, 1, 2], [0], [0]>} : vector<2x8x16xf32>, vector<2x16x32xf32>, vector<2x8x32xf32> -> vector<2x8x32xf32>
    "tpu.trace_stop"() : () -> ()
    %3 = vector.shape_cast %2 : vector<2x8x32xf32> to vector<16x32xf32>
    %c0_5 = arith.constant 0 : index
    %c0_6 = arith.constant 0 : index
    %c0_7 = arith.constant 0 : index
    %4 = vector.load %arg3[%c0_5, %c0_6, %c0_7] : memref<2x16x32xf32, #tpu.memory_space<vmem>>, vector<2x16x32xf32>
    "tpu.trace_start"() <{level = 10 : i32, message = "bnk,bkd->bnd"}> : () -> ()
    %cst_8 = arith.constant dense<0.000000e+00> : vector<2x8x32xf32>
    %5 = tpu.matmul %0, %4, %cst_8 {dimension_numbers = #tpu.dot_dimension_numbers<[2], [1], [1], [2], [0, 0, 0, 1, 1, 2], [0], [0]>} : vector<2x8x16xf32>, vector<2x16x32xf32>, vector<2x8x32xf32> -> vector<2x8x32xf32>
    "tpu.trace_stop"() : () -> ()
    %6 = vector.shape_cast %5 : vector<2x8x32xf32> to vector<16x32xf32>
    %c0_9 = arith.constant 0 : index
    %c0_10 = arith.constant 0 : index
    %c0_11 = arith.constant 0 : index
    %7 = vector.load %arg4[%c0_9, %c0_10, %c0_11] : memref<2x8x32xf32, #tpu.memory_space<vmem>>, vector<2x8x32xf32>
    %8 = vector.shape_cast %7 : vector<2x8x32xf32> to vector<16x32xf32>
    %c0_12 = arith.constant 0 : index
    %c0_13 = arith.constant 0 : index
    %9 = vector.load %arg5[%c0_12, %c0_13] : memref<32x96xf32, #tpu.memory_space<vmem>>, vector<32x96xf32>
    %cst_14 = arith.constant dense<0.000000e+00> : vector<16x96xf32>
    %10 = tpu.matmul %3, %9, %cst_14 {dimension_numbers = #tpu.dot_dimension_numbers<[1], [0], [0], [1], [0, 0, 1, 1], [], []>} : vector<16x32xf32>, vector<32x96xf32>, vector<16x96xf32> -> vector<16x96xf32>
    %c0_15 = arith.constant 0 : index
    %c0_16 = arith.constant 0 : index
    %11 = vector.load %arg6[%c0_15, %c0_16] : memref<32x96xf32, #tpu.memory_space<vmem>>, vector<32x96xf32>
    %cst_17 = arith.constant dense<0.000000e+00> : vector<16x96xf32>
    %12 = tpu.matmul %6, %11, %cst_17 {dimension_numbers = #tpu.dot_dimension_numbers<[1], [0], [0], [1], [0, 0, 1, 1], [], []>} : vector<16x32xf32>, vector<32x96xf32>, vector<16x96xf32> -> vector<16x96xf32>
    %13 = arith.addf %10, %12 : vector<16x96xf32>
    %c0_18 = arith.constant 0 : index
    %c0_19 = arith.constant 0 : index
    %14 = vector.load %arg7[%c0_18, %c0_19] : memref<32x96xf32, #tpu.memory_space<vmem>>, vector<32x96xf32>
    %cst_20 = arith.constant dense<0.000000e+00> : vector<16x96xf32>
    %15 = tpu.matmul %8, %14, %cst_20 {dimension_numbers = #tpu.dot_dimension_numbers<[1], [0], [0], [1], [0, 0, 1, 1], [], []>} : vector<16x32xf32>, vector<32x96xf32>, vector<16x96xf32> -> vector<16x96xf32>
    %16 = arith.addf %13, %15 : vector<16x96xf32>
    %c0_21 = arith.constant 0 : index
    %c0_22 = arith.constant 0 : index
    %17 = vector.load %arg9[%c0_21, %c0_22] : memref<1x96xf32, #tpu.memory_space<vmem>>, vector<1x96xf32>
    %18 = vector.broadcast %17 : vector<1x96xf32> to vector<16x96xf32>
    %19 = arith.addf %16, %18 : vector<16x96xf32>
    %20 = vector.extract_strided_slice %19 {offsets = [0, 0], sizes = [16, 32], strides = [1, 1]} : vector<16x96xf32> to vector<16x32xf32>
    %21 = arith.negf %20 : vector<16x32xf32>
    %22 = math.exp %21 : vector<16x32xf32>
    %cst_23 = arith.constant 1.000000e+00 : f32
    %23 = vector.broadcast %cst_23 : f32 to vector<16x32xf32>
    %24 = arith.addf %23, %22 : vector<16x32xf32>
    %25 = arith.divf %23, %24 : vector<16x32xf32>
    %26 = vector.extract_strided_slice %19 {offsets = [0, 32], sizes = [16, 32], strides = [1, 1]} : vector<16x96xf32> to vector<16x32xf32>
    %27 = arith.negf %26 : vector<16x32xf32>
    %28 = math.exp %27 : vector<16x32xf32>
    %cst_24 = arith.constant 1.000000e+00 : f32
    %29 = vector.broadcast %cst_24 : f32 to vector<16x32xf32>
    %30 = arith.addf %29, %28 : vector<16x32xf32>
    %31 = arith.divf %29, %30 : vector<16x32xf32>
    %32 = arith.mulf %25, %8 : vector<16x32xf32>
    %33 = vector.extract_strided_slice %19 {offsets = [0, 64], sizes = [16, 32], strides = [1, 1]} : vector<16x96xf32> to vector<16x32xf32>
    %c0_25 = arith.constant 0 : index
    %c0_26 = arith.constant 0 : index
    %34 = vector.load %arg8[%c0_25, %c0_26] : memref<32x32xf32, #tpu.memory_space<vmem>>, vector<32x32xf32>
    %cst_27 = arith.constant dense<0.000000e+00> : vector<16x32xf32>
    %35 = tpu.matmul %32, %34, %cst_27 {dimension_numbers = #tpu.dot_dimension_numbers<[1], [0], [0], [1], [0, 0, 1, 1], [], []>} : vector<16x32xf32>, vector<32x32xf32>, vector<16x32xf32> -> vector<16x32xf32>
    %36 = arith.addf %33, %35 : vector<16x32xf32>
    %37 = math.tanh %36 : vector<16x32xf32>
    %cst_28 = arith.constant 1.000000e+00 : f32
    %38 = vector.broadcast %cst_28 : f32 to vector<16x32xf32>
    %39 = arith.subf %38, %31 : vector<16x32xf32>
    %40 = arith.mulf %39, %8 : vector<16x32xf32>
    %41 = arith.mulf %31, %37 : vector<16x32xf32>
    %42 = arith.addf %40, %41 : vector<16x32xf32>
    %43 = vector.shape_cast %42 : vector<16x32xf32> to vector<2x8x32xf32>
    %c0_29 = arith.constant 0 : index
    %c0_30 = arith.constant 0 : index
    %c0_31 = arith.constant 0 : index
    %44 = vector.load %arg10[%c0_29, %c0_30, %c0_31] : memref<2x8x32xf32, #tpu.memory_space<vmem>>, vector<2x8x32xf32>
    tpu.vector_store %arg10[%c0_29, %c0_30, %c0_31], %43 {strides = array<i32>} : memref<2x8x32xf32, #tpu.memory_space<vmem>>, vector<2x8x32xf32>,
    return
  }
  func.func @transform_0(%arg0: i32) -> (i32, i32, i32) {
    %c0_i32 = arith.constant 0 : i32
    %c0_i32_0 = arith.constant 0 : i32
    %c0_i32_1 = arith.constant 0 : i32
    return %arg0, %c0_i32, %c0_i32_0 : i32, i32, i32
  }
  func.func @transform_1(%arg0: i32) -> (i32, i32, i32) {
    %c0_i32 = arith.constant 0 : i32
    %c0_i32_0 = arith.constant 0 : i32
    %c0_i32_1 = arith.constant 0 : i32
    return %arg0, %c0_i32, %c0_i32_0 : i32, i32, i32
  }
  func.func @transform_2(%arg0: i32) -> (i32, i32, i32) {
    %c0_i32 = arith.constant 0 : i32
    %c0_i32_0 = arith.constant 0 : i32
    %c0_i32_1 = arith.constant 0 : i32
    return %arg0, %c0_i32, %c0_i32_0 : i32, i32, i32
  }
  func.func @transform_3(%arg0: i32) -> (i32, i32, i32) {
    %c0_i32 = arith.constant 0 : i32
    %c0_i32_0 = arith.constant 0 : i32
    %c0_i32_1 = arith.constant 0 : i32
    return %arg0, %c0_i32, %c0_i32_0 : i32, i32, i32
  }
  func.func @transform_4(%arg0: i32) -> (i32, i32) {
    %c0_i32 = arith.constant 0 : i32
    %c0_i32_0 = arith.constant 0 : i32
    %c0_i32_1 = arith.constant 0 : i32
    return %c0_i32, %c0_i32_0 : i32, i32
  }
  func.func @transform_5(%arg0: i32) -> (i32, i32) {
    %c0_i32 = arith.constant 0 : i32
    %c0_i32_0 = arith.constant 0 : i32
    %c0_i32_1 = arith.constant 0 : i32
    return %c0_i32, %c0_i32_0 : i32, i32
  }
  func.func @transform_6(%arg0: i32) -> (i32, i32) {
    %c0_i32 = arith.constant 0 : i32
    %c0_i32_0 = arith.constant 0 : i32
    %c0_i32_1 = arith.constant 0 : i32
    return %c0_i32, %c0_i32_0 : i32, i32
  }
  func.func @transform_7(%arg0: i32) -> (i32, i32) {
    %c0_i32 = arith.constant 0 : i32
    %c0_i32_0 = arith.constant 0 : i32
    %c0_i32_1 = arith.constant 0 : i32
    return %c0_i32, %c0_i32_0 : i32, i32
  }
  func.func @transform_8(%arg0: i32) -> (i32, i32) {
    %c0_i32 = arith.constant 0 : i32
    %c0_i32_0 = arith.constant 0 : i32
    %c0_i32_1 = arith.constant 0 : i32
    return %c0_i32, %c0_i32_0 : i32, i32
  }
  func.func @transform_9(%arg0: i32) -> (i32, i32, i32) {
    %c0_i32 = arith.constant 0 : i32
    %c0_i32_0 = arith.constant 0 : i32
    %c0_i32_1 = arith.constant 0 : i32
    return %arg0, %c0_i32, %c0_i32_0 : i32, i32, i32
  }
}

</mosaic_0001>

<bundles_post_ra>
// kernel: propagator_forward.1
= control target key start
LH: loop header
LB: loop body
LE: loop exit
PB: predicated region body
PF: predicated region fallthrough
CT: control target
= control target key end

     0   :  { %14 = vsyncpa [#allocation3], 0  ;;  %s1533_s0 = inlined_call_operand.hbm [shape: f32[2,8,16], index: 0, kind: input, shape index: {}]   ;;  %s1534_s1 = inlined_call_operand.hbm [shape: f32[2,16,32], index: 1, kind: input, shape index: {}]   ;;  %s1535_s2 = inlined_call_operand.hbm [shape: f32[2,16,32], index: 2, kind: input, shape index: {}]   ;;  %s1536_s3 = inlined_call_operand.hbm [shape: f32[2,8,32], index: 3, kind: input, shape index: {}]   ;;  %s1537_s4 = inlined_call_operand.hbm [shape: f32[32,96], index: 4, kind: input, shape index: {}]   ;;  %s1538_s5 = inlined_call_operand.hbm [shape: f32[32,96], index: 5, kind: input, shape index: {}]   ;;  %s1539_s6 = inlined_call_operand.hbm [shape: f32[32,96], index: 6, kind: input, shape index: {}]   ;;  %s1540_s7 = inlined_call_operand.hbm [shape: f32[32,32], index: 7, kind: input, shape index: {}]   ;;  %s1541_s8 = inlined_call_operand.vmem [shape: f32[1,96], index: 8, kind: input, shape index: {}]   ;;  %s1542_s9 = inlined_call_operand.hbm [shape: f32[2,8,32], index: 9, kind: output, shape index: {}]  }
   0x1   :  { %15 = vsyncpa [#allocation6], 0 }
   0x2   :  { %16 = vsyncpa [#allocation9], 0 }
   0x3   :  { %17 = vsyncpa [#allocation12], 0 }
   0x4   :  { %18 = vsyncpa [#allocation15], 0 }
   0x5   :  { %19 = vsyncpa [#allocation4], 0  ;;  %s1282_s30 = smov [#allocation5]   ;;  %s1283_s11 = smov [#allocation8]  }
   0x6   :  { %s37_s10 = sshll.u32 %s1282_s30, 4  ;;  %s61_s12 = sshll.u32 %s1283_s11, 4  ;;  %s38_s10 = int_to_ptr.vmem [resolvable:$true] %s37_s10  ;;  %s1349_s12 = int_to_ptr.vmem [resolvable:$true] %s61_s12 }
   0x7   :  { %s1072_s15 = scalar_lea.hbm %s1534_s1, 512 }
   0x8   :  { %p1073_p0 = scmp.ne.s32.totalorder %s1534_s1, %s1072_s15  ;;  %p1076_p1 = scmp.lt.u32.totalorder %s1072_s15, %s1534_s1 }
   0xa   :  { %p1078_p2 = pnand %p1076_p1, %p1073_p0 }
   0xc   :  { %1081 = shalt.err (!%p1078_p2)
}
   0xd   :  { %s1082_s20 = scalar_lea.vmem %s38_s10, 512  ;;  %p1087_p4 = scmp.lt.s32.totalorder %s38_s10, %s38_s10 }
   0xe   :  { %p1083_p3 = scmp.ne.s32.totalorder %s38_s10, %s1082_s20  ;;  %p1088_p5 = scmp.lt.s32.totalorder %s1082_s20, %s1082_s20 }
  0x10   :  { %p1089_p6 = por %p1088_p5, %p1087_p4 }
  0x12   :  { %p1090_p7 = pnand %p1089_p6, %p1083_p3 }
  0x14   :  { %1093 = shalt.err (!%p1090_p7)
}
  0x15   :  { %s1284_s21 = smov 128   ;;  %s1285_s22 = smov 8  }
  0x16   :  { %43 = dma.hbm_to_vmem [thread:$0]  %s1534_s1, 512, %s38_s10, [#allocation6], %s1284_s21, %s1284_s21, %s1285_s22  }
  0x17   :  { %s1094_s27 = scalar_lea.hbm %s1536_s3, 256 }
  0x18   :  { %p1095_p8 = scmp.ne.s32.totalorder %s1536_s3, %s1094_s27  ;;  %p1098_p9 = scmp.lt.u32.totalorder %s1094_s27, %s1536_s3 }
  0x1a   :  { %p1100_p10 = pnand %p1098_p9, %p1095_p8 }
  0x1c   :  { %1103 = shalt.err (!%p1100_p10)
}
  0x1d   :  { %s1104_s13 = scalar_lea.vmem %s1349_s12, 256  ;;  %p1109_p12 = scmp.lt.s32.totalorder %s1349_s12, %s1349_s12 }
  0x1e   :  { %p1105_p11 = scmp.ne.s32.totalorder %s1349_s12, %s1104_s13  ;;  %p1110_p13 = scmp.lt.s32.totalorder %s1104_s13, %s1104_s13 }
  0x20   :  { %p1111_p0 = por %p1110_p13, %p1109_p12 }
  0x22   :  { %p1112_p1 = pnand %p1111_p0, %p1105_p11 }
  0x24   :  { %1115 = shalt.err (!%p1112_p1)
}
  0x25   :  { %67 = dma.hbm_to_vmem [thread:$0]  %s1536_s3, 256, %s1349_s12, [#allocation9], %s1284_s21, %s1284_s21, %s1285_s22  }
  0x26   :  { %s1286_s14 = smov [#allocation11]   ;;  %s1287_s16 = smov [#allocation2]  }
  0x27   :  { %s85_s15 = sshll.u32 %s1286_s14, 4  ;;  %s25_s17 = sshll.u32 %s1287_s16, 4  ;;  %s86_s15 = int_to_ptr.vmem [resolvable:$true] %s85_s15  ;;  %s1386_s17 = int_to_ptr.vmem [resolvable:$true] %s25_s17 }
  0x28   :  { %s1116_s20 = scalar_lea.hbm %s1538_s5, 512 }
  0x29   :  { %p1117_p2 = scmp.ne.s32.totalorder %s1538_s5, %s1116_s20  ;;  %p1120_p3 = scmp.lt.u32.totalorder %s1116_s20, %s1538_s5 }
  0x2b   :  { %p1122_p4 = pnand %p1120_p3, %p1117_p2 }
  0x2d   :  { %1125 = shalt.err (!%p1122_p4)
}
  0x2e   :  { %s1126_s3 = scalar_lea.vmem %s86_s15, 512  ;;  %p1131_p6 = scmp.lt.s32.totalorder %s86_s15, %s86_s15 }
  0x2f   :  { %p1127_p5 = scmp.ne.s32.totalorder %s86_s15, %s1126_s3  ;;  %p1132_p7 = scmp.lt.s32.totalorder %s1126_s3, %s1126_s3 }
  0x31   :  { %p1133_p8 = por %p1132_p7, %p1131_p6 }
  0x33   :  { %p1134_p9 = pnand %p1133_p8, %p1127_p5 }
  0x35   :  { %1137 = shalt.err (!%p1134_p9)
}
  0x36   :  { %91 = dma.hbm_to_vmem [thread:$0]  %s1538_s5, 512, %s86_s15, [#allocation12], %s1284_s21, %s1284_s21, %s1285_s22  }
  0x37   :  { %s1138_s30 = scalar_lea.hbm %s1533_s0, 256 }
  0x38   :  { %p1139_p10 = scmp.ne.s32.totalorder %s1533_s0, %s1138_s30  ;;  %p1142_p11 = scmp.lt.u32.totalorder %s1138_s30, %s1533_s0 }
  0x3a   :  { %p1144_p12 = pnand %p1142_p11, %p1139_p10 }
  0x3c   :  { %1147 = shalt.err (!%p1144_p12)
}
  0x3d   :  { %s1148_s14 = scalar_lea.vmem %s1386_s17, 256  ;;  %p1153_p0 = scmp.lt.s32.totalorder %s1386_s17, %s1386_s17 }
  0x3e   :  { %p1149_p13 = scmp.ne.s32.totalorder %s1386_s17, %s1148_s14  ;;  %p1154_p1 = scmp.lt.s32.totalorder %s1148_s14, %s1148_s14 }
  0x40   :  { %p1155_p2 = por %p1154_p1, %p1153_p0 }
  0x42   :  { %p1156_p3 = pnand %p1155_p2, %p1149_p13 }
  0x44   :  { %1159 = shalt.err (!%p1156_p3)
}
  0x45   :  { %31 = dma.hbm_to_vmem [thread:$0]  %s1533_s0, 256, %s1386_s17, [#allocation3], %s1284_s21, %s1284_s21, %s1285_s22  }
  0x46   :  { %s1288_s16 = smov [#allocation7]   ;;  %s1289_s19 = smov [#allocation10]  }
  0x47   :  { %s49_s18 = sshll.u32 %s1288_s16, 4  ;;  %s73_s20 = sshll.u32 %s1289_s19, 4  ;;  %s50_s18 = int_to_ptr.vmem [resolvable:$true] %s49_s18  ;;  %s1423_s20 = int_to_ptr.vmem [resolvable:$true] %s73_s20 }
  0x48   :  { %s1160_s25 = scalar_lea.hbm %s1535_s2, 512 }
  0x49   :  { %p1161_p4 = scmp.ne.s32.totalorder %s1535_s2, %s1160_s25  ;;  %p1164_p5 = scmp.lt.u32.totalorder %s1160_s25, %s1535_s2 }
  0x4b   :  { %p1166_p6 = pnand %p1164_p5, %p1161_p4 }
  0x4d   :  { %1169 = shalt.err (!%p1166_p6)
}
  0x4e   :  { %s1170_s0 = scalar_lea.vmem %s50_s18, 512  ;;  %p1175_p8 = scmp.lt.s32.totalorder %s50_s18, %s50_s18 }
  0x4f   :  { %p1171_p7 = scmp.ne.s32.totalorder %s50_s18, %s1170_s0  ;;  %p1176_p9 = scmp.lt.s32.totalorder %s1170_s0, %s1170_s0 }
  0x51   :  { %p1177_p10 = por %p1176_p9, %p1175_p8 }
  0x53   :  { %p1178_p11 = pnand %p1177_p10, %p1171_p7 }
  0x55   :  { %1181 = shalt.err (!%p1178_p11)
}
  0x56   :  { %55 = dma.hbm_to_vmem [thread:$0]  %s1535_s2, 512, %s50_s18, [#allocation6], %s1284_s21, %s1284_s21, %s1285_s22  }
  0x57   :  { %s1182_s11 = scalar_lea.hbm %s1537_s4, 512 }
  0x58   :  { %p1183_p12 = scmp.ne.s32.totalorder %s1537_s4, %s1182_s11  ;;  %p1186_p13 = scmp.lt.u32.totalorder %s1182_s11, %s1537_s4 }
  0x5a   :  { %p1188_p0 = pnand %p1186_p13, %p1183_p12 }
  0x5c   :  { %1191 = shalt.err (!%p1188_p0)
}
  0x5d   :  { %s1192_s5 = scalar_lea.vmem %s1423_s20, 512  ;;  %p1197_p2 = scmp.lt.s32.totalorder %s1423_s20, %s1423_s20 }
  0x5e   :  { %p1193_p1 = scmp.ne.s32.totalorder %s1423_s20, %s1192_s5  ;;  %p1198_p3 = scmp.lt.s32.totalorder %s1192_s5, %s1192_s5 }
  0x60   :  { %p1199_p4 = por %p1198_p3, %p1197_p2 }
  0x62   :  { %p1200_p5 = pnand %p1199_p4, %p1193_p1 }
  0x64   :  { %1203 = shalt.err (!%p1200_p5)
}
  0x65   :  { %79 = dma.hbm_to_vmem [thread:$0]  %s1537_s4, 512, %s1423_s20, [#allocation9], %s1284_s21, %s1284_s21, %s1285_s22  }
  0x66   :  { %s1290_s16 = smov [#allocation13]   ;;  %s1291_s19 = smov [#allocation14]  }
  0x67   :  { %s97_s18 = sshll.u32 %s1290_s16, 4  ;;  %s109_s23 = sshll.u32 %s1291_s19, 4  ;;  %s98_s18 = int_to_ptr.vmem [resolvable:$true] %s97_s18  ;;  %s1460_s23 = int_to_ptr.vmem [resolvable:$true] %s109_s23 }
  0x68   :  { %s1204_s26 = scalar_lea.hbm %s1539_s6, 512 }
  0x69   :  { %p1205_p6 = scmp.ne.s32.totalorder %s1539_s6, %s1204_s26  ;;  %p1208_p7 = scmp.lt.u32.totalorder %s1204_s26, %s1539_s6 }
  0x6b   :  { %p1210_p8 = pnand %p1208_p7, %p1205_p6 }
  0x6d   :  { %1213 = shalt.err (!%p1210_p8)
}
  0x6e   :  { %s1214_s4 = scalar_lea.vmem %s98_s18, 512  ;;  %p1219_p10 = scmp.lt.s32.totalorder %s98_s18, %s98_s18 }
  0x6f   :  { %p1215_p9 = scmp.ne.s32.totalorder %s98_s18, %s1214_s4  ;;  %p1220_p11 = scmp.lt.s32.totalorder %s1214_s4, %s1214_s4 }
  0x71   :  { %p1221_p12 = por %p1220_p11, %p1219_p10 }
  0x73   :  { %p1222_p13 = pnand %p1221_p12, %p1215_p9 }
  0x75   :  { %1225 = shalt.err (!%p1222_p13)
}
  0x76   :  { %103 = dma.hbm_to_vmem [thread:$0]  %s1539_s6, 512, %s98_s18, [#allocation12], %s1284_s21, %s1284_s21, %s1285_s22  }
  0x77   :  { %s1226_s30 = scalar_lea.hbm %s1540_s7, 512 }
  0x78   :  { %p1227_p0 = scmp.ne.s32.totalorder %s1540_s7, %s1226_s30  ;;  %p1230_p1 = scmp.lt.u32.totalorder %s1226_s30, %s1540_s7 }
  0x7a   :  { %p1232_p2 = pnand %p1230_p1, %p1227_p0 }
  0x7c   :  { %1235 = shalt.err (!%p1232_p2)
}
  0x7d   :  { %s1236_s14 = scalar_lea.vmem %s1460_s23, 512  ;;  %p1241_p4 = scmp.lt.s32.totalorder %s1460_s23, %s1460_s23 }
  0x7e   :  { %p1237_p3 = scmp.ne.s32.totalorder %s1460_s23, %s1236_s14  ;;  %p1242_p5 = scmp.lt.s32.totalorder %s1236_s14, %s1236_s14 }
  0x80   :  { %p1243_p6 = por %p1242_p5, %p1241_p4 }
  0x82   :  { %p1244_p7 = pnand %p1243_p6, %p1237_p3 }
  0x84   :  { %1247 = shalt.err (!%p1244_p7)
}
  0x85   :  { %115 = dma.hbm_to_vmem [thread:$0]  %s1540_s7, 512, %s1460_s23, [#allocation15], %s1284_s21, %s1284_s21, %s1285_s22  }
  0x86   :  { %1270 = dma.done.wait [#allocation3], 256  }
  0x87   :  { %1271 = vsyncadd [#allocation3], 4294967040 }
  0x88   :  { %1272 = dma.done.wait [#allocation6], 1024  }
  0x89   :  { %1273 = vsyncadd [#allocation6], 4294966272 }
  0x8a   :  { %1274 = dma.done.wait [#allocation9], 768  }
  0x8b   :  { %1275 = vsyncadd [#allocation9], 4294966528 }
  0x8c   :  { %1276 = dma.done.wait [#allocation12], 1024  }
  0x8d   :  { %1277 = vsyncadd [#allocation12], 4294966272 }
  0x8e   :  { %1278 = dma.done.wait [#allocation15], 512  }
  0x8f   :  { %1279 = vsyncadd [#allocation15], 4294966784  ;;  %v1292_v0 = vmov 0.0|0.0   ;;  %vm1293_vm0 = vmmov 0   ;;  %v1294_v1 = vmov 0.0   ;;  %v144_v2 = vld [vmem:[#allocation5] sm:$0xff] }
  0x90   :  { %995 = vmatprep.subr.bf16.mxu0 %v1292_v0  ;;  %998 = vmatprep.subr.bf16.mxu1 %v1292_v0  ;;  %v145_v3 = vld [vmem:[#allocation5 + $0x8] sm:$0xff]  ;;  %v146_v4 = vld [vmem:[#allocation5 + $0x10] sm:$0xff]  ;;  %v147_v6 = vld [vmem:[#allocation5 + $0x18] sm:$0xff]  ;;  %vm148_vm1 = vcmask 130048   ;;  %s1295_s7 = smov 32   ;;  %vm449_vm2 = vcmask 261120  }
  0x91   :  { %927 = vmatprep.mubr.msk.f32.mxu0 %vm1293_vm0, %v1294_v1  ;;  %934 = vmatprep.mubr.msk.f32.mxu1 %vm1293_vm0, %v1294_v1  ;;  %v996_v5 = vpack.c.bf16 %v145_v3, %v144_v2  ;;  %v142_v7 = vld [vmem:[#allocation2] sm:$0xff]  ;;  %v999_v8 = vpack.c.bf16 %v147_v6, %v146_v4  ;;  %v295_v9 = vld [vmem:[#allocation7] sm:$0xff]  ;;  %v296_v10 = vld [vmem:[#allocation7 + $0x8] sm:$0xff]  ;;  %s1297_s16 = smov 96   ;;  %s1298_s18 = smov [#allocation16]  }
  0x92   :  { %v297_v11 = vld [vmem:[#allocation7 + $0x10] sm:$0xff]  ;;  %v1002_v12 = vpack.c.bf16 %v296_v10, %v295_v9  ;;  %v298_v13 = vld [vmem:[#allocation7 + $0x18] sm:$0xff]  ;;  %v443_v19 = vld [vmem:[#allocation10 + $0x10] sm:$0xff]  ;;  %s856_s19 = sshll.u32 %s1298_s18, 4  ;;  %s857_s19 = int_to_ptr.vmem [resolvable:$true] %s856_s19 }
  0x93   :  { %997 = vmatpush3.bf16.msra.mxu0 %v996_v5  ;;  %v441_v14 = vld [vmem:[#allocation10] sm:$0xff]  ;;  %v442_v15 = vld [vmem:[#allocation10 + $0x8] sm:$0xff]  ;;  %1000 = vmatpush3.bf16.msra.mxu1 %v999_v8  ;;  %v1005_v17 = vpack.c.bf16 %v298_v13, %v297_v11  ;;  %v444_v20 = vld [vmem:[#allocation10 + $0x18] sm:$0xff]  ;;  %s1248_s23 = scalar_lea.vmem %s857_s19, 256  ;;  %p1253_p9 = scmp.lt.s32.totalorder %s857_s19, %s857_s19 }
  0x94   :  { %v143_v16 = vld [vmem:[#allocation2 + $0x8] sm:$0xff]  ;;  %1001 = vmatprep.subr.bf16.mxu0 %v1292_v0  ;;  %1004 = vmatprep.subr.bf16.mxu1 %v1292_v0  ;;  %v1015_v18 = vpack.c.bf16 %v442_v15, %v441_v14  ;;  %v1019_v21 = vpack.c.bf16 %v444_v20, %v443_v19  ;;  %v445_v22 = vld [vmem:[#allocation11] sm:$0xff]  ;;  %v447_v28 = vld [vmem:[#allocation11 + $0x10] sm:$0xff]  ;;  %p1249_p8 = scmp.ne.s32.totalorder %s857_s19, %s1248_s23  ;;  %p1254_p10 = scmp.lt.s32.totalorder %s1248_s23, %s1248_s23 }
  0x95   :  { %v446_v23 = vld [vmem:[#allocation11 + $0x8] sm:$0xff]  ;;  %v612_v25 = vld [vmem:[#allocation13] sm:$0xff]  ;;  %v448_v29 = vld [vmem:[#allocation11 + $0x18] sm:$0xff] }
  0x96   :  { %928 = vmatmul.mubr.msk.f32.vlgmr.msra.gmra.mrb[0].mxu0 %vm148_vm1, %v142_v7  ;;  %935 = vmatmul.mubr.msk.f32.vlgmr.msra.gmra.mrb[0].mxu1 %vm148_vm1, %v143_v16  ;;  %v1007_v24 = vpack.c.bf16 %v446_v23, %v445_v22  ;;  %v613_v26 = vld [vmem:[#allocation13 + $0x8] sm:$0xff]  ;;  %v1011_v30 = vpack.c.bf16 %v448_v29, %v447_v28  ;;  %v439_v31 = vld [vmem:[#allocation8] sm:$0xff]  ;;  %v440_v32 = vld [vmem:[#allocation8 + $0x8] sm:$0xff]  ;;  %p1255_p11 = por %p1254_p10, %p1253_p9 }
  0x97   :  { %1003 = vmatpush3.bf16.msra.mxu0 %v1002_v12  ;;  %1006 = vmatpush3.bf16.msra.mxu1 %v1005_v17  ;;  %v1023_v27 = vpack.c.bf16 %v613_v26, %v612_v25  ;;  %v614_v33 = vld [vmem:[#allocation13 + $0x10] sm:$0xff]  ;;  %v615_v34 = vld [vmem:[#allocation13 + $0x18] sm:$0xff]  ;;  %v722_v44 = vld [vmem:[#allocation14] sm:$0xff] }
  0x98   :  { %941 = vmatprep.mubr.msk.f32.mxu0 %vm1293_vm0, %v1294_v1  ;;  %948 = vmatprep.mubr.msk.f32.mxu1 %vm1293_vm0, %v1294_v1  ;;  %v1027_v36 = vpack.c.bf16 %v615_v34, %v614_v33  ;;  %v723_v45 = vld [vmem:[#allocation14 + $0x8] sm:$0xff]  ;;  %v724_v47 = vld [vmem:[#allocation14 + $0x10] sm:$0xff]  ;;  %v725_v48 = vld [vmem:[#allocation14 + $0x18] sm:$0xff]  ;;  %p1256_p12 = pnand %p1255_p11, %p1249_p8 }
  0x99   :  { %1016 = vmatprep.subr.bf16.mxu0 %v1015_v18  ;;  %1008 = vmatprep.subr.bf16.mxu1 %v1007_v24  ;;  %v1031_v46 = vpack.c.bf16 %v723_v45, %v722_v44  ;;  %v1035_v49 = vpack.c.bf16 %v725_v48, %v724_v47  ;;  %v882_v53 = vld [vmem:[%s1541_s8] ss:$0 sm:$0xff]  ;;  %s1296_s8 = smov 64  }
  0x9a   :  { %942 = vmatmul.mubr.msk.f32.vlgmr.msra.gmra.mrb[2].mxu0 %vm148_vm1, %v142_v7  ;;  %949 = vmatmul.mubr.msk.f32.vlgmr.msra.gmra.mrb[2].mxu1 %vm148_vm1, %v143_v16 }
  0x9b   :  { %1018 = vmatpush3.bf16.msra.mxu0 %v1015_v18  ;;  %1010 = vmatpush3.bf16.msra.mxu1 %v1007_v24 }
  0x9c   :  { %1020 = vmatprep.subr.bf16.mxu0 %v1019_v21  ;;  %1012 = vmatprep.subr.bf16.mxu1 %v1011_v30 }
  0x9d   :  { %821 = vrot.lane.b32.xlu1 %v439_v31, %s1295_s7 }
  0x9f   :  { %1022 = vmatpush3.bf16.msra.mxu0 %v1019_v21  ;;  %1014 = vmatpush3.bf16.msra.mxu1 %v1011_v30 }
  0xa0   :  { %1024 = vmatprep.subr.bf16.mxu0 %v1023_v27  ;;  %1032 = vmatprep.subr.bf16.mxu1 %v1031_v46 }
  0xa1   :  { %823 = vrot.lane.b32.xlu1 %v440_v32, %s1295_s7 }
 0x10f   :  { %v822_v13 = vpop.permute.xlu1 %821 }
 0x113   :  { %v824_v15 = vpop.permute.xlu1 %823 }
 0x169   :  { %v218_v35 = vpop.f32.mrb[0].mxu0  ;;  %v291_v37 = vpop.f32.mrb[0].mxu1 }
 0x16a   :  { %v929_v38 = vpop.f32.mrb[1].mxu0  ;;  %970 = vmatprep.mubr.msk.f32.mxu0 %vm449_vm2, %v218_v35  ;;  %v936_v39 = vpop.f32.mrb[1].mxu1 }
 0x16b   :  { %971 = vmatmul.mubr.msk.f32.vlgmr.msra.gmra.mrb[4].mxu0 %vm449_vm2, %v291_v37 }
 0x16c   :  { %1026 = vmatpush3.bf16.msra.mxu0 %v1023_v27  ;;  %981 = vmatprep.mubr.msk.f32.mxu0 %vm449_vm2, %v439_v31 }
 0x16d   :  { %1028 = vmatprep.subr.bf16.mxu0 %v1027_v36  ;;  %v365_v40 = vpop.f32.mrb[2].mxu0  ;;  %v435_v42 = vpop.f32.mrb[2].mxu1 }
 0x16e   :  { %v943_v41 = vpop.f32.mrb[3].mxu0  ;;  %959 = vmatprep.mubr.msk.f32.mxu1 %vm449_vm2, %v365_v40  ;;  %v950_v43 = vpop.f32.mrb[3].mxu1 }
 0x16f   :  { %960 = vmatmul.mubr.msk.f32.vlgmr.msra.gmra.mrb[4].mxu1 %vm449_vm2, %v435_v42 }
 0x170   :  { %1030 = vmatpush3.bf16.msra.mxu0 %v1027_v36  ;;  %1034 = vmatpush3.bf16.msra.mxu1 %v1031_v46 }
 0x171   :  { %1036 = vmatprep.subr.bf16.mxu1 %v1035_v49 }
 0x173   :  { %982 = vmatmul.mubr.msk.f32.vlgmr.msra.gmra.mrb[4].mxu0 %vm449_vm2, %v440_v32 }
 0x174   :  { %1038 = vmatpush3.bf16.msra.mxu1 %v1035_v49 }
 0x242   :  { %v961_v50 = vpop.f32.mrb[4].mxu1 }
 0x243   :  { %v522_v51 = vpop.f32.mrb[5].mxu1 }
 0x246   :  { %v983_v52 = vpop.f32.mrb[4].mxu0 }
 0x247   :  { %v1039_v54 = vadd.f32 %v983_v52, %v961_v50  ;;  %v688_v55 = vpop.f32.mrb[5].mxu0 }
 0x248   :  { %v1040_v56 = vadd.f32 %v688_v55, %v522_v51 }
 0x249   :  { %v707_v57 = vadd.f32 %v1039_v54, %v882_v53 }
 0x24a   :  { %v706_v58 = vadd.f32 %v1040_v56, %v882_v53 }
 0x24b   :  { %v884_v59 = vmul.f32 -1.442695, %v707_v57 }
 0x24c   :  { %v883_v60 = vmul.f32 -1.442695, %v706_v58 }
 0x24d   :  { %1060 = vpow2.f32 %v884_v59 }
 0x24e   :  { %1062 = vpow2.f32 %v883_v60 }
 0x257   :  { %v1061_v61 = vpop.eup %1060 }
 0x258   :  { %v1063_v62 = vpop.eup %1062  ;;  %v715_v63 = vadd.f32 1.0, %v1061_v61 }
 0x259   :  { %v714_v0 = vadd.f32 1.0, %v1063_v62 }
 0x25a   :  { %1064 = vrcp.f32 %v715_v63 }
 0x25b   :  { %1066 = vrcp.f32 %v714_v0 }
 0x264   :  { %v1065_v1 = vpop.eup %1064 }
 0x265   :  { %v1067_v2 = vpop.eup %1066  ;;  %v721_v4 = vmul.f32 %v1065_v1, %v440_v32  ;;  %v820_v18 = vsub.f32 1.0, %v1065_v1 }
 0x266   :  { %v720_v3 = vmul.f32 %v1067_v2, %v439_v31  ;;  %v819_v14 = vsub.f32 1.0, %v1067_v2 }
 0x267   :  { %v828_v22 = vmul.f32 %v824_v15, %v820_v18 }
 0x268   :  { %992 = vmatprep.mubr.msk.f32.mxu1 %vm449_vm2, %v720_v3  ;;  %v827_v17 = vmul.f32 %v822_v13, %v819_v14 }
 0x269   :  { %993 = vmatmul.mubr.msk.f32.vlgmr.msra.gmra.mrb[6].mxu1 %vm449_vm2, %v721_v4 }
 0x33c   :  { %v994_v5 = vpop.f32.mrb[6].mxu1 }
 0x33d   :  { %v798_v6 = vpop.f32.mrb[7].mxu1 }
 0x33e   :  { %809 = vrot.lane.b32.xlu0 %v798_v6, %s1296_s8 }
 0x342   :  { %811 = vrot.lane.b32.xlu0 %v994_v5, %s1296_s8 }
 0x3b0   :  { %v810_v7 = vpop.permute.xlu0 %809 }
 0x3b1   :  { %v815_v8 = vadd.f32 %v810_v7, %v706_v58 }
 0x3b3   :  { %1068 = vtanh.f32 %v815_v8 }
 0x3b4   :  { %v812_v9 = vpop.permute.xlu0 %811 }
 0x3b5   :  { %v816_v10 = vadd.f32 %v812_v9, %v707_v57 }
 0x3b7   :  { %1070 = vtanh.f32 %v816_v10 }
 0x3bd   :  { %v1069_v11 = vpop.eup %1068 }
 0x3be   :  { %831 = vrot.lane.b32.xlu0 %v1069_v11, %s1297_s16 }
 0x3c1   :  { %v1071_v12 = vpop.eup %1070 }
 0x3c2   :  { %833 = vrot.lane.b32.xlu1 %v1071_v12, %s1297_s16 }
 0x430   :  { %v832_v16 = vpop.permute.xlu0 %831 }
 0x431   :  { %v837_v19 = vmul.f32 %v1067_v2, %v832_v16 }
 0x433   :  { %v839_v20 = vadd.f32 %v837_v19, %v827_v17 }
 0x434   :  { %v834_v21 = vpop.permute.xlu1 %833 }
 0x435   :  { %v838_v23 = vmul.f32 %v1065_v1, %v834_v21  ;;  %843 = vrot.lane.b32.xlu0 %v839_v20, %s1297_s16 }
 0x437   :  { %v840_v24 = vadd.f32 %v838_v23, %v828_v22 }
 0x439   :  { %845 = vrot.lane.b32.xlu1 %v840_v24, %s1297_s16 }
 0x4a7   :  { %v844_v25 = vpop.permute.xlu0 %843 }
 0x4a8   :  { %849 = vst.msk [vmem:[#allocation16] sm:$0xff] %vm449_vm2, %v844_v25 }
 0x4ab   :  { %v846_v26 = vpop.permute.xlu1 %845 }
 0x4ac   :  { %850 = vst.msk [vmem:[#allocation16 + $0x8] sm:$0xff] %vm449_vm2, %v846_v26 }
 0x4ad   :  { %1259 = shalt.err (!%p1256_p12)
}
 0x4ae   :  { %s1260_s26 = scalar_lea.hbm %s1542_s9, 256 }
 0x4af   :  { %p1261_p13 = scmp.ne.s32.totalorder %s1542_s9, %s1260_s26  ;;  %p1264_p0 = scmp.lt.u32.totalorder %s1260_s26, %s1542_s9 }
 0x4b1   :  { %p1266_p1 = pnand %p1264_p0, %p1261_p13 }
 0x4b3   :  { %1269 = shalt.err (!%p1266_p1)
}
 0x4b4   :  { %862 = dma.vmem_to_hbm [thread:$0]  %s857_s19, 256, %s1542_s9, [#allocation4], %s1284_s21, %s1284_s21, %s1285_s22  }
 0x4b5   :  { %1280 = dma.done.wait [#allocation4], 256  }
 0x4b6   :  { %1281 = vsyncadd [#allocation4], 4294967040 }
 0x4b7   :  { %866 = vsyncpa [#allocation3], 1 }
 0x4b8   :  { %867 = vsyncpa [#allocation6], 1 }
 0x4b9   :  { %868 = vsyncpa [#allocation9], 1 }
 0x4ba   :  { %869 = vsyncpa [#allocation12], 1 }
 0x4bb   :  { %870 = vsyncpa [#allocation15], 1 }
 0x4bc   :  { %871 = vsyncpa [#allocation4], 1 }

</bundles_post_ra>
